<compile_context>
chip_gen: v7x
topology: tpu7x:2x2x1
jax: 0.10.0
libtpu: 0.0.40
codegen_flags: <defaults>
</compile_context>

<pallas_src>
import functools

import jax
import jax.numpy as jnp
from jax import lax
from jax.experimental import pallas as pl
from jax.experimental.pallas import tpu as pltpu

LANES = 128
MAX_ROW_TILE = 8192   # rows per block -> 4 MiB f32 per input per grid step


def _focal_pow(base, gamma):
    """(base ** gamma) with exact integer powers (gamma=2 default -> one vmul)."""
    g = float(gamma)
    if g.is_integer() and g >= 0:
        return lax.integer_pow(base, int(g))
    return jnp.exp(jnp.float32(g) * jnp.log(base))


def _focal_kernel(x_ref, t_ref, sum_ref, cnt_ref, acc_sum, acc_cnt, *,
                  gamma, ignore_index, rows, row_tile, num_tiles,
                  tiles_per_split, has_replay):
    c = pl.program_id(0)               # split index ("parallel")
    i = pl.program_id(1)               # reduction step within split ("arbitrary")
    tile_idx = c * tiles_per_split + i

    @pl.when(i == 0)
    def _():
        acc_sum[...] = jnp.zeros_like(acc_sum)
        acc_cnt[...] = jnp.zeros_like(acc_cnt)

    x = x_ref[...].astype(jnp.float32)
    t = t_ref[...].astype(jnp.float32)

    eps = jnp.float32(1e-8)
    one = jnp.float32(1.0)
    zero = jnp.float32(0.0)

    valid = t != jnp.float32(ignore_index)
    xc = jnp.clip(x, eps, one - eps)
    tc = jnp.clip(t, eps, one - eps)
    pt = (one - tc) * (one - xc) + tc * xc
    term = -_focal_pow(one - pt, gamma) * jnp.log(pt)

    # jnp.where (select), not multiply-by-mask: safely zeroes any NaN terms.
    contrib_sum = jnp.where(valid, term, zero)
    contrib_cnt = jnp.where(valid, one, zero)

    sub = row_tile // 8

    def fold(v):
        # Leading-axis fold to one (8, LANES) vreg: pure VPU adds, no XLU.
        return jnp.sum(v.reshape(sub, 8, LANES), axis=0)

    is_partial = (rows % row_tile) != 0   # static Python bool
    last_tile = num_tiles - 1

    if is_partial:
        # Full tiles: no per-element masking beyond the ignore_index compare.
        @pl.when(jnp.logical_and(tile_idx < num_tiles, tile_idx != last_tile))
        def _():
            acc_sum[...] += fold(contrib_sum)
            acc_cnt[...] += fold(contrib_cnt)

        # The single partial boundary tile: mask the garbage tail rows here only.
        @pl.when(tile_idx == last_tile)
        def _():
            tail_rows = rows - last_tile * row_tile   # static int
            row_ids = lax.broadcasted_iota(jnp.int32, (row_tile, LANES), 0)
            m = row_ids < tail_rows
            acc_sum[...] += fold(jnp.where(m, contrib_sum, zero))
            acc_cnt[...] += fold(jnp.where(m, contrib_cnt, zero))
    elif has_replay:
        # Uneven split: skip the clamped/replayed trailing tile entirely.
        @pl.when(tile_idx < num_tiles)
        def _():
            acc_sum[...] += fold(contrib_sum)
            acc_cnt[...] += fold(contrib_cnt)
    else:
        acc_sum[...] += fold(contrib_sum)
        acc_cnt[...] += fold(contrib_cnt)

    @pl.when(i == pl.num_programs(1) - 1)
    def _():
        sum_ref[0] = acc_sum[...]
        cnt_ref[0] = acc_cnt[...]


def _default_num_splits():
    """2-way parallel split only on dual-TensorCore chips (v7x); else 1."""
    try:
        kind = jax.devices()[0].device_kind.lower()
    except Exception:
        return 1
    return 2 if "v7" in kind else 1


def focal_loss_2d(outputs, targets, gamma=2, ignore_index=255, num_splits=None):
    """Pallas TPU implementation of FocalLoss2d.forward."""
    # Stream native dtypes (bf16 stays bf16); cast to f32 inside the kernel.
    x = outputs.reshape(-1)
    t = targets.reshape(-1)
    n = x.shape[0]

    # Only pad (a copy) in the rare ragged case n % 128 != 0; pad targets with
    # ignore_index so padded lanes self-mask inside the kernel.
    n_pad = -(-n // LANES) * LANES
    if n_pad != n:
        x = jnp.pad(x, (0, n_pad - n), constant_values=0.5)
        t = jnp.pad(t, (0, n_pad - n), constant_values=float(ignore_index))
    rows = n_pad // LANES
    x2 = x.reshape(rows, LANES)
    t2 = t.reshape(rows, LANES)

    row_tile = min(MAX_ROW_TILE, -(-rows // 8) * 8)   # sublane-aligned
    num_tiles = -(-rows // row_tile)
    if num_splits is None:
        num_splits = _default_num_splits()
    num_splits = max(1, min(num_splits, num_tiles))
    tiles_per_split = -(-num_tiles // num_splits)
    has_replay = num_splits * tiles_per_split != num_tiles

    def data_index(c, i):
        # Clamp so the trailing split never DMAs past the end of the array;
        # the (fully skipped) replayed tile just re-reads the last valid block.
        b = c * tiles_per_split + i
        return (jnp.minimum(b, num_tiles - 1), 0)

    def out_index(c, i):
        return (c, 0, 0)

    kernel = functools.partial(
        _focal_kernel, gamma=gamma, ignore_index=ignore_index, rows=rows,
        row_tile=row_tile, num_tiles=num_tiles,
        tiles_per_split=tiles_per_split, has_replay=has_replay)

    part_sum, part_cnt = pl.pallas_call(
        kernel,
        out_shape=(
            jax.ShapeDtypeStruct((num_splits, 8, LANES), jnp.float32),
            jax.ShapeDtypeStruct((num_splits, 8, LANES), jnp.float32),
        ),
        grid_spec=pltpu.PrefetchScalarGridSpec(
            num_scalar_prefetch=0,
            grid=(num_splits, tiles_per_split),
            in_specs=[
                pl.BlockSpec((row_tile, LANES), data_index),
                pl.BlockSpec((row_tile, LANES), data_index),
            ],
            out_specs=(
                pl.BlockSpec((1, 8, LANES), out_index),
                pl.BlockSpec((1, 8, LANES), out_index),
            ),
            scratch_shapes=[
                pltpu.VMEM((8, LANES), jnp.float32),   # sum accumulator (1 vreg)
                pltpu.VMEM((8, LANES), jnp.float32),   # count accumulator (1 vreg)
            ],
        ),
        compiler_params=pltpu.CompilerParams(
            dimension_semantics=("parallel", "arbitrary"),
            vmem_limit_bytes=32 * 1024 * 1024,
        ),
    )(x2, t2)

    total = jnp.sum(part_sum)
    count = jnp.sum(part_cnt)
    # NOTE: if every element has target == ignore_index, count == 0 and the
    # result is NaN, matching PyTorch's mean-of-empty behaviour.
    return total / count


def _focal_ref(outputs, targets, gamma=2, ignore_index=255):
    """Pure-JAX transcription of the PyTorch forward (masked mean)."""
    eps = 1e-8
    t = targets.reshape(-1)
    x = outputs.reshape(-1)
    mask = t != ignore_index
    tt = jnp.clip(t.astype(jnp.float32), eps, 1.0 - eps)
    xx = jnp.clip(x.astype(jnp.float32), eps, 1.0 - eps)
    pt = (1.0 - tt) * (1.0 - xx) + tt * xx
    term = -_focal_pow(1.0 - pt, gamma) * jnp.log(pt)
    term = jnp.where(mask, term, 0.0)
    return jnp.sum(term) / jnp.sum(mask.astype(jnp.float32))


if __name__ == "__main__":
    key = jax.random.PRNGKey(0)
    k1, k2, k3 = jax.random.split(key, 3)
    B, C, H, W = 2, 4, 16, 16
    # Predicted probabilities in (0, 1) and binary targets with some
    # ignore_index (255) pixels, NCHW layout.
    outputs = jax.random.uniform(k1, (B, C, H, W), dtype=jnp.float32)
    targets = (jax.random.uniform(k2, (B, C, H, W)) > 0.5).astype(jnp.float32)
    targets = jnp.where(jax.random.uniform(k3, (B, C, H, W)) < 0.1,
                        jnp.float32(255.0), targets)

    loss = jax.block_until_ready(focal_loss_2d(outputs, targets))
    ref = jax.block_until_ready(_focal_ref(outputs, targets))
    assert jnp.allclose(loss, ref, atol=1e-5, rtol=1e-4), (loss, ref)
    print("KERNEL_OK")
</pallas_src>

<mosaic_0001>
module attributes {stable_mosaic.version = 11 : i64} {
  func.func @_focal_kernel(%arg0: i32, %arg1: i32, %arg2: memref<16x128xf32, #tpu.memory_space<vmem>>, %arg3: memref<16x128xf32, #tpu.memory_space<vmem>>, %arg4: memref<1x8x128xf32, #tpu.memory_space<vmem>>, %arg5: memref<1x8x128xf32, #tpu.memory_space<vmem>>, %arg6: memref<8x128xf32, #tpu.memory_space<vmem>>, %arg7: memref<8x128xf32, #tpu.memory_space<vmem>>) attributes {dimension_semantics = [#tpu.dimension_semantics<parallel>, #tpu.dimension_semantics<arbitrary>], iteration_bounds = array<i64: 1, 1>, scalar_prefetch = 0 : i64, scratch_operands = 2 : i64, tpu.core_type = #tpu.core_type<tc>, window_params = [{transform_indices = @transform_0, window_bounds = array<i64: 16, 128>}, {transform_indices = @transform_1, window_bounds = array<i64: 16, 128>}, {transform_indices = @transform_2, window_bounds = array<i64: 1, 8, 128>}, {transform_indices = @transform_3, window_bounds = array<i64: 1, 8, 128>}]} {
    %c0_i32 = arith.constant 0 : i32
    %0 = arith.cmpi eq, %arg1, %c0_i32 : i32
    %1 = arith.extui %0 : i1 to i32
    %c0_i32_0 = arith.constant 0 : i32
    %2 = arith.cmpi ne, %1, %c0_i32_0 : i32
    scf.if %2 {
      %cst_29 = arith.constant 0.000000e+00 : f32
      %49 = vector.broadcast %cst_29 : f32 to vector<8x128xf32>
      %c0_30 = arith.constant 0 : index
      %c0_31 = arith.constant 0 : index
      %50 = vector.load %arg6[%c0_30, %c0_31] : memref<8x128xf32, #tpu.memory_space<vmem>>, vector<8x128xf32>
      tpu.vector_store %arg6[%c0_30, %c0_31], %49 {strides = array<i32>} : memref<8x128xf32, #tpu.memory_space<vmem>>, vector<8x128xf32>,
      %cst_32 = arith.constant 0.000000e+00 : f32
      %51 = vector.broadcast %cst_32 : f32 to vector<8x128xf32>
      %c0_33 = arith.constant 0 : index
      %c0_34 = arith.constant 0 : index
      %52 = vector.load %arg7[%c0_33, %c0_34] : memref<8x128xf32, #tpu.memory_space<vmem>>, vector<8x128xf32>
      tpu.vector_store %arg7[%c0_33, %c0_34], %51 {strides = array<i32>} : memref<8x128xf32, #tpu.memory_space<vmem>>, vector<8x128xf32>,
    } else {
    }
    %c0 = arith.constant 0 : index
    %c0_1 = arith.constant 0 : index
    %3 = vector.load %arg2[%c0, %c0_1] : memref<16x128xf32, #tpu.memory_space<vmem>>, vector<16x128xf32>
    %c0_2 = arith.constant 0 : index
    %c0_3 = arith.constant 0 : index
    %4 = vector.load %arg3[%c0_2, %c0_3] : memref<16x128xf32, #tpu.memory_space<vmem>>, vector<16x128xf32>
    %cst = arith.constant 2.550000e+02 : f32
    %5 = vector.broadcast %cst : f32 to vector<16x128xf32>
    %6 = arith.cmpf one, %4, %5 : vector<16x128xf32>
    %cst_4 = arith.constant 1.000000e+00 : f32
    %cst_5 = arith.constant 9.99999993E-9 : f32
    %7 = arith.subf %cst_4, %cst_5 : f32
    %cst_6 = arith.constant 9.99999993E-9 : f32
    %8 = vector.broadcast %cst_6 : f32 to vector<16x128xf32>
    %9 = arith.maximumf %8, %3 : vector<16x128xf32>
    %10 = vector.broadcast %7 : f32 to vector<16x128xf32>
    %11 = arith.minimumf %10, %9 : vector<16x128xf32>
    %cst_7 = arith.constant 1.000000e+00 : f32
    %cst_8 = arith.constant 9.99999993E-9 : f32
    %12 = arith.subf %cst_7, %cst_8 : f32
    %cst_9 = arith.constant 9.99999993E-9 : f32
    %13 = vector.broadcast %cst_9 : f32 to vector<16x128xf32>
    %14 = arith.maximumf %13, %4 : vector<16x128xf32>
    %15 = vector.broadcast %12 : f32 to vector<16x128xf32>
    %16 = arith.minimumf %15, %14 : vector<16x128xf32>
    %cst_10 = arith.constant 1.000000e+00 : f32
    %17 = vector.broadcast %cst_10 : f32 to vector<16x128xf32>
    %18 = arith.subf %17, %16 : vector<16x128xf32>
    %cst_11 = arith.constant 1.000000e+00 : f32
    %19 = vector.broadcast %cst_11 : f32 to vector<16x128xf32>
    %20 = arith.subf %19, %11 : vector<16x128xf32>
    %21 = arith.mulf %18, %20 : vector<16x128xf32>
    %22 = arith.mulf %16, %11 : vector<16x128xf32>
    %23 = arith.addf %21, %22 : vector<16x128xf32>
    %cst_12 = arith.constant 1.000000e+00 : f32
    %24 = vector.broadcast %cst_12 : f32 to vector<16x128xf32>
    %25 = arith.subf %24, %23 : vector<16x128xf32>
    %26 = arith.mulf %25, %25 : vector<16x128xf32>
    %cst_13 = arith.constant 0.000000e+00 : f32
    %27 = vector.broadcast %cst_13 : f32 to vector<16x128xf32>
    %28 = arith.subf %27, %26 : vector<16x128xf32>
    %29 = math.log %23 : vector<16x128xf32>
    %30 = arith.mulf %28, %29 : vector<16x128xf32>
    %cst_14 = arith.constant 0.000000e+00 : f32
    %31 = vector.broadcast %cst_14 : f32 to vector<16x128xf32>
    %32 = arith.select %6, %30, %31 : vector<16x128xi1>, vector<16x128xf32>
    %cst_15 = arith.constant 1.000000e+00 : f32
    %cst_16 = arith.constant 0.000000e+00 : f32
    %33 = vector.broadcast %cst_15 : f32 to vector<16x128xf32>
    %34 = vector.broadcast %cst_16 : f32 to vector<16x128xf32>
    %35 = arith.select %6, %33, %34 : vector<16x128xi1>, vector<16x128xf32>
    %c0_17 = arith.constant 0 : index
    %c0_18 = arith.constant 0 : index
    %36 = vector.load %arg6[%c0_17, %c0_18] : memref<8x128xf32, #tpu.memory_space<vmem>>, vector<8x128xf32>
    %37 = vector.shape_cast %32 : vector<16x128xf32> to vector<2x8x128xf32>
    %cst_19 = arith.constant dense<0.000000e+00> : vector<8x128xf32>
    %38 = vector.multi_reduction <add>, %37, %cst_19 [0] : vector<2x8x128xf32> to vector<8x128xf32>
    %39 = arith.addf %36, %38 : vector<8x128xf32>
    %c0_20 = arith.constant 0 : index
    %c0_21 = arith.constant 0 : index
    %40 = vector.load %arg6[%c0_20, %c0_21] : memref<8x128xf32, #tpu.memory_space<vmem>>, vector<8x128xf32>
    tpu.vector_store %arg6[%c0_20, %c0_21], %39 {strides = array<i32>} : memref<8x128xf32, #tpu.memory_space<vmem>>, vector<8x128xf32>,
    %c0_22 = arith.constant 0 : index
    %c0_23 = arith.constant 0 : index
    %41 = vector.load %arg7[%c0_22, %c0_23] : memref<8x128xf32, #tpu.memory_space<vmem>>, vector<8x128xf32>
    %42 = vector.shape_cast %35 : vector<16x128xf32> to vector<2x8x128xf32>
    %cst_24 = arith.constant dense<0.000000e+00> : vector<8x128xf32>
    %43 = vector.multi_reduction <add>, %42, %cst_24 [0] : vector<2x8x128xf32> to vector<8x128xf32>
    %44 = arith.addf %41, %43 : vector<8x128xf32>
    %c0_25 = arith.constant 0 : index
    %c0_26 = arith.constant 0 : index
    %45 = vector.load %arg7[%c0_25, %c0_26] : memref<8x128xf32, #tpu.memory_space<vmem>>, vector<8x128xf32>
    tpu.vector_store %arg7[%c0_25, %c0_26], %44 {strides = array<i32>} : memref<8x128xf32, #tpu.memory_space<vmem>>, vector<8x128xf32>,
    %c0_i32_27 = arith.constant 0 : i32
    %46 = arith.cmpi eq, %arg1, %c0_i32_27 : i32
    %47 = arith.extui %46 : i1 to i32
    %c0_i32_28 = arith.constant 0 : i32
    %48 = arith.cmpi ne, %47, %c0_i32_28 : i32
    scf.if %48 {
      %c0_29 = arith.constant 0 : index
      %c0_30 = arith.constant 0 : index
      %49 = vector.load %arg6[%c0_29, %c0_30] : memref<8x128xf32, #tpu.memory_space<vmem>>, vector<8x128xf32>
      %c0_31 = arith.constant 0 : index
      %c0_32 = arith.constant 0 : index
      %c0_33 = arith.constant 0 : index
      %50 = vector.load %arg4[%c0_31, %c0_32, %c0_33] : memref<1x8x128xf32, #tpu.memory_space<vmem>>, vector<1x8x128xf32>
      %51 = vector.shape_cast %50 : vector<1x8x128xf32> to vector<8x128xf32>
      %52 = vector.shape_cast %49 : vector<8x128xf32> to vector<1x8x128xf32>
      tpu.vector_store %arg4[%c0_31, %c0_32, %c0_33], %52 {strides = array<i32>} : memref<1x8x128xf32, #tpu.memory_space<vmem>>, vector<1x8x128xf32>,
      %c0_34 = arith.constant 0 : index
      %c0_35 = arith.constant 0 : index
      %53 = vector.load %arg7[%c0_34, %c0_35] : memref<8x128xf32, #tpu.memory_space<vmem>>, vector<8x128xf32>
      %c0_36 = arith.constant 0 : index
      %c0_37 = arith.constant 0 : index
      %c0_38 = arith.constant 0 : index
      %54 = vector.load %arg5[%c0_36, %c0_37, %c0_38] : memref<1x8x128xf32, #tpu.memory_space<vmem>>, vector<1x8x128xf32>
      %55 = vector.shape_cast %54 : vector<1x8x128xf32> to vector<8x128xf32>
      %56 = vector.shape_cast %53 : vector<8x128xf32> to vector<1x8x128xf32>
      tpu.vector_store %arg5[%c0_36, %c0_37, %c0_38], %56 {strides = array<i32>} : memref<1x8x128xf32, #tpu.memory_space<vmem>>, vector<1x8x128xf32>,
    } else {
    }
    return
  }
  func.func @transform_0(%arg0: i32, %arg1: i32) -> (i32, i32) {
    %c1_i32 = arith.constant 1 : i32
    %0 = arith.muli %arg0, %c1_i32 : i32
    %1 = arith.addi %0, %arg1 : i32
    %c0_i32 = arith.constant 0 : i32
    %2 = arith.minsi %1, %c0_i32 : i32
    %c0_i32_0 = arith.constant 0 : i32
    %c0_i32_1 = arith.constant 0 : i32
    return %2, %c0_i32_0 : i32, i32
  }
  func.func @transform_1(%arg0: i32, %arg1: i32) -> (i32, i32) {
    %c1_i32 = arith.constant 1 : i32
    %0 = arith.muli %arg0, %c1_i32 : i32
    %1 = arith.addi %0, %arg1 : i32
    %c0_i32 = arith.constant 0 : i32
    %2 = arith.minsi %1, %c0_i32 : i32
    %c0_i32_0 = arith.constant 0 : i32
    %c0_i32_1 = arith.constant 0 : i32
    return %2, %c0_i32_0 : i32, i32
  }
  func.func @transform_2(%arg0: i32, %arg1: i32) -> (i32, i32, i32) {
    %c0_i32 = arith.constant 0 : i32
    %c0_i32_0 = arith.constant 0 : i32
    %c0_i32_1 = arith.constant 0 : i32
    return %arg0, %c0_i32, %c0_i32_0 : i32, i32, i32
  }
  func.func @transform_3(%arg0: i32, %arg1: i32) -> (i32, i32, i32) {
    %c0_i32 = arith.constant 0 : i32
    %c0_i32_0 = arith.constant 0 : i32
    %c0_i32_1 = arith.constant 0 : i32
    return %arg0, %c0_i32, %c0_i32_0 : i32, i32, i32
  }
}

</mosaic_0001>

<bundles_post_ra>
// kernel: tpu_custom_call.1
= control target key start
LH: loop header
LB: loop body
LE: loop exit
PB: predicated region body
PF: predicated region fallthrough
CT: control target
= control target key end

     0   :  { %9 = vsyncpa [#allocation5], 0  ;;  %s344_s0 = inlined_call_operand.hbm [shape: f32[16,128], index: 0, kind: input, shape index: {}]   ;;  %s345_s1 = inlined_call_operand.hbm [shape: f32[16,128], index: 1, kind: input, shape index: {}]   ;;  %s346_s2 = inlined_call_operand.hbm [shape: f32[1,8,128], index: 2, kind: output, shape index: {0}]   ;;  %s347_s3 = inlined_call_operand.hbm [shape: f32[1,8,128], index: 3, kind: output, shape index: {1}]  }
   0x1   :  { %10 = vsyncpa [#allocation8], 0 }
   0x2   :  { %11 = vsyncpa [#allocation6], 0 }
   0x3   :  { %12 = vsyncpa [#allocation11], 0  ;;  %s265_s12 = smov [#allocation4]   ;;  %s169_s16 = scalar_lea.hbm %s344_s0, 256 }
   0x4   :  { %s24_s13 = sshll.u32 %s265_s12, 4  ;;  %p170_p0 = scmp.ne.s32.totalorder %s344_s0, %s169_s16  ;;  %s25_s13 = int_to_ptr.vmem [resolvable:$true] %s24_s13 }
   0x5   :  { %p173_p1 = scmp.lt.u32.totalorder %s169_s16, %s344_s0 }
   0x7   :  { %p175_p2 = pnand %p173_p1, %p170_p0 }
   0x9   :  { %178 = shalt.err (!%p175_p2)
}
   0xa   :  { %s179_s21 = scalar_lea.vmem %s25_s13, 256  ;;  %p184_p4 = scmp.lt.s32.totalorder %s25_s13, %s25_s13 }
   0xb   :  { %p180_p3 = scmp.ne.s32.totalorder %s25_s13, %s179_s21  ;;  %p185_p5 = scmp.lt.s32.totalorder %s179_s21, %s179_s21 }
   0xd   :  { %p186_p6 = por %p185_p5, %p184_p4 }
   0xf   :  { %p187_p7 = pnand %p186_p6, %p180_p3 }
  0x11   :  { %190 = shalt.err (!%p187_p7)
}
  0x12   :  { %s266_s22 = smov 128   ;;  %s267_s23 = smov 8  }
  0x13   :  { %30 = dma.hbm_to_vmem [thread:$0]  %s344_s0, 256, %s25_s13, [#allocation5], %s266_s22, %s266_s22, %s267_s23  }
  0x14   :  { %s268_s26 = smov [#allocation7]   ;;  %s191_s30 = scalar_lea.hbm %s345_s1, 256 }
  0x15   :  { %s42_s27 = sshll.u32 %s268_s26, 4  ;;  %p192_p8 = scmp.ne.s32.totalorder %s345_s1, %s191_s30  ;;  %s43_s27 = int_to_ptr.vmem [resolvable:$true] %s42_s27 }
  0x16   :  { %p195_p9 = scmp.lt.u32.totalorder %s191_s30, %s345_s1 }
  0x18   :  { %p197_p10 = pnand %p195_p9, %p192_p8 }
  0x1a   :  { %200 = shalt.err (!%p197_p10)
}
  0x1b   :  { %s201_s8 = scalar_lea.vmem %s43_s27, 256  ;;  %p206_p12 = scmp.lt.s32.totalorder %s43_s27, %s43_s27 }
  0x1c   :  { %p202_p11 = scmp.ne.s32.totalorder %s43_s27, %s201_s8  ;;  %p207_p13 = scmp.lt.s32.totalorder %s201_s8, %s201_s8 }
  0x1e   :  { %p208_p0 = por %p207_p13, %p206_p12 }
  0x20   :  { %p209_p1 = pnand %p208_p0, %p202_p11 }
  0x22   :  { %212 = shalt.err (!%p209_p1)
}
  0x23   :  { %48 = dma.hbm_to_vmem [thread:$0]  %s345_s1, 256, %s43_s27, [#allocation8], %s266_s22, %s266_s22, %s267_s23  }
  0x24   :  { %257 = dma.done.wait [#allocation5], 256  }
  0x25   :  { %258 = vsyncadd [#allocation5], 4294967040 }
  0x26   :  { %259 = dma.done.wait [#allocation8], 256  }
  0x27   :  { %260 = vsyncadd [#allocation8], 4294967040  ;;  %v69_v0 = vld [vmem:[#allocation4] sm:$0xff]  ;;  %v70_v1 = vld [vmem:[#allocation4 + $0x8] sm:$0xff]  ;;  %s269_s10 = smov [#allocation10]   ;;  %v270_v8 = vmov 0.0  }
  0x28   :  { %v71_v2 = vld [vmem:[#allocation7] sm:$0xff]  ;;  %s140_s11 = sshll.u32 %s269_s10, 4  ;;  %v72_v3 = vld [vmem:[#allocation7 + $0x8] sm:$0xff]  ;;  %v75_v4 = vmax.f32 %v69_v0, 1e-08  ;;  %s141_s11 = int_to_ptr.vmem [resolvable:$true] %s140_s11 }
  0x29   :  { %vm73_vm0 = vcmp.ne.f32.partialorder %v71_v2, 255.0  ;;  %v76_v5 = vmax.f32 %v70_v1, 1e-08  ;;  %vm74_vm1 = vcmp.ne.f32.partialorder %v72_v3, 255.0  ;;  %v79_v6 = vmax.f32 %v71_v2, 1e-08  ;;  %p218_p3 = scmp.lt.s32.totalorder %s141_s11, %s141_s11 }
  0x2a   :  { %v80_v7 = vmax.f32 %v72_v3, 1e-08  ;;  %v107_v9 = vsel %vm73_vm0, 1.0, %v270_v8  ;;  %v77_v10 = vmin.f32 %v75_v4, 1.0  ;;  %v108_v12 = vsel %vm74_vm1, 1.0, %v270_v8  ;;  %s213_s1 = scalar_lea.vmem %s141_s11, 128 }
  0x2b   :  { %v78_v11 = vmin.f32 %v76_v5, 1.0  ;;  %v81_v13 = vmin.f32 %v79_v6, 1.0  ;;  %v114_v15 = vadd.f32 %v108_v12, %v107_v9  ;;  %p214_p2 = scmp.ne.s32.totalorder %s141_s11, %s213_s1  ;;  %p219_p4 = scmp.lt.s32.totalorder %s213_s1, %s213_s1 }
  0x2c   :  { %v82_v14 = vmin.f32 %v80_v7, 1.0  ;;  %v85_v16 = vsub.f32 1.0, %v77_v10 }
  0x2d   :  { %v86_v17 = vsub.f32 1.0, %v78_v11  ;;  %v83_v18 = vsub.f32 1.0, %v81_v13  ;;  %v89_v20 = vmul.f32 %v81_v13, %v77_v10  ;;  %123 = vst [vmem:[#allocation10] sm:$0xff] %v114_v15  ;;  %p220_p5 = por %p219_p4, %p218_p3 }
  0x2e   :  { %v84_v19 = vsub.f32 1.0, %v82_v14  ;;  %v90_v21 = vmul.f32 %v82_v14, %v78_v11 }
  0x2f   :  { %p221_p6 = pnand %p220_p5, %p214_p2 }
  0x31   :  { %224 = shalt.err (!%p221_p6)
}
  0x32   :  { %s225_s14 = scalar_lea.hbm %s347_s3, 128 }
  0x33   :  { %p226_p7 = scmp.ne.s32.totalorder %s347_s3, %s225_s14  ;;  %p229_p8 = scmp.lt.u32.totalorder %s225_s14, %s347_s3 }
  0x35   :  { %p231_p9 = pnand %p229_p8, %p226_p7 }
  0x37   :  { %234 = shalt.err (!%p231_p9)
}
  0x38   :  { %143 = dma.vmem_to_hbm [thread:$0]  %s141_s11, 128, %s347_s3, [#allocation11]   ;;  %v87_v22 = vmul.f32 %v85_v16, %v83_v18  ;;  %v88_v23 = vmul.f32 %v86_v17, %v84_v19 }
  0x39   :  { %s271_s21 = smov [#allocation9]  }
  0x3a   :  { %v91_v24 = vadd.f32 %v89_v20, %v87_v22  ;;  %v92_v25 = vadd.f32 %v90_v21, %v88_v23  ;;  %s130_s3 = sshll.u32 %s271_s21, 4  ;;  %s131_s3 = int_to_ptr.vmem [resolvable:$true] %s130_s3 }
  0x3b   :  { %s235_s22 = scalar_lea.vmem %s131_s3, 128  ;;  %p240_p11 = scmp.lt.s32.totalorder %s131_s3, %s131_s3 }
  0x3c   :  { %165 = vlog2.f32 %v91_v24  ;;  %v93_v26 = vsub.f32 1.0, %v91_v24  ;;  %v94_v27 = vsub.f32 1.0, %v92_v25  ;;  %p236_p10 = scmp.ne.s32.totalorder %s131_s3, %s235_s22  ;;  %p241_p12 = scmp.lt.s32.totalorder %s235_s22, %s235_s22 }
  0x3d   :  { %167 = vlog2.f32 %v92_v25 }
  0x3e   :  { %v95_v28 = vmul.f32 %v93_v26, %v93_v26  ;;  %v96_v29 = vmul.f32 %v94_v27, %v94_v27  ;;  %p242_p13 = por %p241_p12, %p240_p11 }
  0x40   :  { %v97_v30 = vsub.f32 0.0, %v95_v28  ;;  %v98_v32 = vsub.f32 0.0, %v96_v29  ;;  %p243_p0 = pnand %p242_p13, %p236_p10 }
  0x46   :  { %v166_v31 = vpop.eup %165 }
  0x47   :  { %v168_v33 = vpop.eup %167  ;;  %v100_v34 = vmul.f32 0.6931472, %v166_v31 }
  0x48   :  { %v102_v35 = vmul.f32 0.6931472, %v168_v33 }
  0x49   :  { %v103_v36 = vmul.f32 %v100_v34, %v97_v30 }
  0x4a   :  { %v104_v37 = vmul.f32 %v102_v35, %v98_v32 }
  0x4b   :  { %v105_v38 = vsel %vm73_vm0, %v103_v36, 0.0 }
  0x4c   :  { %v106_v39 = vsel %vm74_vm1, %v104_v37, 0.0 }
  0x4d   :  { %v110_v40 = vadd.f32 %v106_v39, %v105_v38 }
  0x4f   :  { %121 = vst [vmem:[#allocation9] sm:$0xff] %v110_v40 }
  0x50   :  { %246 = shalt.err (!%p243_p0)
}
  0x51   :  { %s247_s25 = scalar_lea.hbm %s346_s2, 128 }
  0x52   :  { %p248_p1 = scmp.ne.s32.totalorder %s346_s2, %s247_s25  ;;  %p251_p2 = scmp.lt.u32.totalorder %s247_s25, %s346_s2 }
  0x54   :  { %p253_p3 = pnand %p251_p2, %p248_p1 }
  0x56   :  { %256 = shalt.err (!%p253_p3)
}
  0x57   :  { %133 = dma.vmem_to_hbm [thread:$0]  %s131_s3, 128, %s346_s2, [#allocation6]  }
  0x58   :  { %261 = dma.done.wait [#allocation6], 128  }
  0x59   :  { %262 = vsyncadd [#allocation6], 4294967168 }
  0x5a   :  { %263 = dma.done.wait [#allocation11], 128  }
  0x5b   :  { %264 = vsyncadd [#allocation11], 4294967168 }
  0x5c   :  { %150 = vsyncpa [#allocation5], 1 }
  0x5d   :  { %151 = vsyncpa [#allocation8], 1 }
  0x5e   :  { %152 = vsyncpa [#allocation6], 1 }
  0x5f   :  { %153 = vsyncpa [#allocation11], 1 }

</bundles_post_ra>
